<compile_context>
chip_gen: v5e
topology: v5e:2x2
jax: 0.10.0
libtpu: 0.0.40
codegen_flags: <defaults>
</compile_context>

<pallas_src>
import functools

import jax
import jax.numpy as jnp
from jax.experimental import pallas as pl
from jax.experimental.pallas import tpu as pltpu


def _round_up(x: int, m: int) -> int:
    return (x + m - 1) // m * m


def _linear_qnet_kernel(x_ref, w1_ref, b1_ref, w2_ref, b2_ref, o_ref):
    # hidden = relu(x @ W1 + b1) ; bias add / ReLU ride in free VALU slots.
    h = jnp.dot(
        x_ref[...], w1_ref[...],
        preferred_element_type=jnp.float32,
        precision=jax.lax.Precision.HIGHEST,
    )
    h = jnp.maximum(h + b1_ref[...], 0.0)
    # out = hidden @ W2 + b2
    out = jnp.dot(
        h, w2_ref[...],
        preferred_element_type=jnp.float32,
        precision=jax.lax.Precision.HIGHEST,
    )
    o_ref[...] = (out + b2_ref[...]).astype(o_ref.dtype)


def pad_params(w1, b1, w2, b2):
    """One-time conversion of logical params to lane-padded kernel params.

    w1 : [in, hid]  (PyTorch linear1.weight.T)   -> [in, hid_p]
    b1 : [1, hid]                                 -> [1, hid_p]
    w2 : [hid, out] (PyTorch linear2.weight.T)    -> [hid_p, out_p]
    b2 : [1, out]                                 -> [1, out_p]
    Done once at init/checkpoint-conversion time, NOT per forward call.
    """
    in_size, hid_size = w1.shape
    out_size = w2.shape[1]
    hid_p = _round_up(hid_size, 128)
    out_p = _round_up(out_size, 128)
    w1_p = jnp.pad(w1, ((0, 0), (0, hid_p - hid_size)))
    b1_p = jnp.pad(b1, ((0, 0), (0, hid_p - hid_size)))
    w2_p = jnp.pad(w2, ((0, hid_p - hid_size), (0, out_p - out_size)))
    b2_p = jnp.pad(b2, ((0, 0), (0, out_p - out_size)))
    return w1_p, b1_p, w2_p, b2_p


@functools.partial(jax.jit, static_argnames=("out_size", "batch_tile"))
def linear_qnet_forward(x, w1_p, b1_p, w2_p, b2_p, out_size, batch_tile: int = 512):
    """LinearQNet forward: relu(x @ W1 + b1) @ W2 + b2.

    x      : [B, input_size] float32 (logical width, unpadded)
    w1_p.. : pre-padded params from `pad_params`
    returns: [B, out_size] float32
    """
    B, in_size = x.shape
    hid_p = w1_p.shape[1]
    out_p = w2_p.shape[1]

    # Batch tile: multiple of 8, no larger than needed, and capped at ~B/2 so the
    # "parallel" grid axis has >= 2 steps for megacore sharding (v7x). Default 512
    # keeps the (tb, 128) f32 hidden intermediate comfortably within vregs.
    bt = max(8, _round_up(batch_tile, 8))
    tb = min(bt, _round_up(B, 8), max(8, _round_up(pl.cdiv(B, 2), 8)))
    num_tiles = pl.cdiv(B, tb)

    flops = 2 * B * (in_size * hid_p + hid_p * out_p)
    bytes_accessed = 4 * (
        B * in_size                       # x
        + in_size * hid_p + hid_p         # W1, b1
        + hid_p * out_p + out_p           # W2, b2
        + B * out_p                       # out
    )

    out_padded = pl.pallas_call(
        _linear_qnet_kernel,
        out_shape=jax.ShapeDtypeStruct((B, out_p), jnp.float32),
        grid_spec=pl.GridSpec(
            grid=(num_tiles,),
            in_specs=[
                # x tile streams over the batch grid at logical lane width.
                pl.BlockSpec((tb, in_size), lambda i: (i, 0)),
                # Weights / biases: constant block index -> VMEM-resident.
                pl.BlockSpec((in_size, hid_p), lambda i: (0, 0)),
                pl.BlockSpec((1, hid_p), lambda i: (0, 0)),
                pl.BlockSpec((hid_p, out_p), lambda i: (0, 0)),
                pl.BlockSpec((1, out_p), lambda i: (0, 0)),
            ],
            out_specs=pl.BlockSpec((tb, out_p), lambda i: (i, 0)),
        ),
        compiler_params=pltpu.CompilerParams(
            dimension_semantics=("parallel",),  # shard batch tiles across TCs (v7x)
        ),
        cost_estimate=pl.CostEstimate(
            flops=flops, transcendentals=0, bytes_accessed=bytes_accessed),
    )(x, w1_p, b1_p, w2_p, b2_p)

    # Lane-dense kernel output; slice back to logical width inside the same jit.
    return out_padded[:, :out_size]


def init_params(key, input_size, hidden_size, output_size):
    """Deterministic init mimicking PyTorch nn.Linear defaults (U[-1/sqrt(fan_in), +])."""
    k1, k2, k3, k4 = jax.random.split(key, 4)
    bound1 = 1.0 / jnp.sqrt(jnp.float32(input_size))
    bound2 = 1.0 / jnp.sqrt(jnp.float32(hidden_size))
    w1 = jax.random.uniform(k1, (input_size, hidden_size), jnp.float32, -bound1, bound1)
    b1 = jax.random.uniform(k2, (1, hidden_size), jnp.float32, -bound1, bound1)
    w2 = jax.random.uniform(k3, (hidden_size, output_size), jnp.float32, -bound2, bound2)
    b2 = jax.random.uniform(k4, (1, output_size), jnp.float32, -bound2, bound2)
    return w1, b1, w2, b2


def _reference(x, w1, b1, w2, b2):
    h = jnp.maximum(jnp.dot(x, w1, precision=jax.lax.Precision.HIGHEST) + b1, 0.0)
    return jnp.dot(h, w2, precision=jax.lax.Precision.HIGHEST) + b2


if __name__ == "__main__":
    # Shapes consistent with a DQN state -> Q-values net.
    input_size, hidden_size, output_size = 11, 32, 3

    key = jax.random.PRNGKey(0)
    key_x, key_x2, key_p = jax.random.split(key, 3)
    w1, b1, w2, b2 = init_params(key_p, input_size, hidden_size, output_size)
    # One-time param conversion (hoisted out of the per-call forward).
    w1_p, b1_p, w2_p, b2_p = pad_params(w1, b1, w2, b2)
    w1_p, b1_p, w2_p, b2_p = jax.block_until_ready((w1_p, b1_p, w2_p, b2_p))

    # Case 1: tiny online-inference batch (single 8-row block).
    batch = 8
    x = jax.random.normal(key_x, (batch, input_size), jnp.float32)
    out = jax.block_until_ready(
        linear_qnet_forward(x, w1_p, b1_p, w2_p, b2_p, out_size=output_size))
    ref = _reference(x, w1, b1, w2, b2)
    assert out.shape == (batch, output_size)
    assert jnp.allclose(out, ref, atol=1e-5, rtol=1e-5)

    # Case 2: replay-buffer-sized batch (exercises the 2-tile "parallel" batch grid
    # and the partial last block: 300 rows over 152-row tiles).
    batch2 = 300
    x2 = jax.random.normal(key_x2, (batch2, input_size), jnp.float32)
    out2 = jax.block_until_ready(
        linear_qnet_forward(x2, w1_p, b1_p, w2_p, b2_p, out_size=output_size))
    ref2 = _reference(x2, w1, b1, w2, b2)
    assert out2.shape == (batch2, output_size)
    assert jnp.allclose(out2, ref2, atol=1e-5, rtol=1e-5)

    print("KERNEL_OK")
</pallas_src>

<mosaic_0001>
module attributes {stable_mosaic.version = 11 : i64} {
  func.func @_linear_qnet_kernel(%arg0: i32, %arg1: memref<8x11xf32, #tpu.memory_space<vmem>>, %arg2: memref<11x128xf32, #tpu.memory_space<vmem>>, %arg3: memref<1x128xf32, #tpu.memory_space<vmem>>, %arg4: memref<128x128xf32, #tpu.memory_space<vmem>>, %arg5: memref<1x128xf32, #tpu.memory_space<vmem>>, %arg6: memref<8x128xf32, #tpu.memory_space<vmem>>) attributes {dimension_semantics = [#tpu.dimension_semantics<parallel>], iteration_bounds = array<i64: 1>, scalar_prefetch = 0 : i64, scratch_operands = 0 : i64, tpu.core_type = #tpu.core_type<tc>, window_params = [{transform_indices = @transform_0, window_bounds = array<i64: 8, 11>}, {pipeline_mode = #tpu.pipeline_mode<synchronous>, transform_indices = @transform_1, window_bounds = array<i64: 11, 128>}, {pipeline_mode = #tpu.pipeline_mode<synchronous>, transform_indices = @transform_2, window_bounds = array<i64: 1, 128>}, {pipeline_mode = #tpu.pipeline_mode<synchronous>, transform_indices = @transform_3, window_bounds = array<i64: 128, 128>}, {pipeline_mode = #tpu.pipeline_mode<synchronous>, transform_indices = @transform_4, window_bounds = array<i64: 1, 128>}, {transform_indices = @transform_5, window_bounds = array<i64: 8, 128>}]} {
    %c0 = arith.constant 0 : index
    %c0_0 = arith.constant 0 : index
    %0 = vector.load %arg1[%c0, %c0_0] : memref<8x11xf32, #tpu.memory_space<vmem>>, vector<8x11xf32>
    %c0_1 = arith.constant 0 : index
    %c0_2 = arith.constant 0 : index
    %1 = vector.load %arg2[%c0_1, %c0_2] : memref<11x128xf32, #tpu.memory_space<vmem>>, vector<11x128xf32>
    %cst = arith.constant dense<0.000000e+00> : vector<8x128xf32>
    %2 = tpu.matmul %0, %1, %cst {dimension_numbers = #tpu.dot_dimension_numbers<[1], [0], [0], [1], [0, 0, 1, 1], [], []>, precision = #tpu.contract_precision<fp32>} : vector<8x11xf32>, vector<11x128xf32>, vector<8x128xf32> -> vector<8x128xf32>
    %c0_3 = arith.constant 0 : index
    %c0_4 = arith.constant 0 : index
    %3 = vector.load %arg3[%c0_3, %c0_4] : memref<1x128xf32, #tpu.memory_space<vmem>>, vector<1x128xf32>
    %4 = vector.broadcast %3 : vector<1x128xf32> to vector<8x128xf32>
    %5 = arith.addf %2, %4 : vector<8x128xf32>
    %cst_5 = arith.constant 0.000000e+00 : f32
    %6 = vector.broadcast %cst_5 : f32 to vector<8x128xf32>
    %7 = arith.maximumf %5, %6 : vector<8x128xf32>
    %c0_6 = arith.constant 0 : index
    %c0_7 = arith.constant 0 : index
    %8 = vector.load %arg4[%c0_6, %c0_7] : memref<128x128xf32, #tpu.memory_space<vmem>>, vector<128x128xf32>
    %cst_8 = arith.constant dense<0.000000e+00> : vector<8x128xf32>
    %9 = tpu.matmul %7, %8, %cst_8 {dimension_numbers = #tpu.dot_dimension_numbers<[1], [0], [0], [1], [0, 0, 1, 1], [], []>, precision = #tpu.contract_precision<fp32>} : vector<8x128xf32>, vector<128x128xf32>, vector<8x128xf32> -> vector<8x128xf32>
    %c0_9 = arith.constant 0 : index
    %c0_10 = arith.constant 0 : index
    %10 = vector.load %arg5[%c0_9, %c0_10] : memref<1x128xf32, #tpu.memory_space<vmem>>, vector<1x128xf32>
    %11 = vector.broadcast %10 : vector<1x128xf32> to vector<8x128xf32>
    %12 = arith.addf %9, %11 : vector<8x128xf32>
    %c0_11 = arith.constant 0 : index
    %c0_12 = arith.constant 0 : index
    %13 = vector.load %arg6[%c0_11, %c0_12] : memref<8x128xf32, #tpu.memory_space<vmem>>, vector<8x128xf32>
    tpu.vector_store %arg6[%c0_11, %c0_12], %12 {strides = array<i32>} : memref<8x128xf32, #tpu.memory_space<vmem>>, vector<8x128xf32>,
    return
  }
  func.func @transform_0(%arg0: i32) -> (i32, i32) {
    %c0_i32 = arith.constant 0 : i32
    %c0_i32_0 = arith.constant 0 : i32
    return %arg0, %c0_i32 : i32, i32
  }
  func.func @transform_1(%arg0: i32) -> (i32, i32) {
    %c0_i32 = arith.constant 0 : i32
    %c0_i32_0 = arith.constant 0 : i32
    %c0_i32_1 = arith.constant 0 : i32
    return %c0_i32, %c0_i32_0 : i32, i32
  }
  func.func @transform_2(%arg0: i32) -> (i32, i32) {
    %c0_i32 = arith.constant 0 : i32
    %c0_i32_0 = arith.constant 0 : i32
    %c0_i32_1 = arith.constant 0 : i32
    return %c0_i32, %c0_i32_0 : i32, i32
  }
  func.func @transform_3(%arg0: i32) -> (i32, i32) {
    %c0_i32 = arith.constant 0 : i32
    %c0_i32_0 = arith.constant 0 : i32
    %c0_i32_1 = arith.constant 0 : i32
    return %c0_i32, %c0_i32_0 : i32, i32
  }
  func.func @transform_4(%arg0: i32) -> (i32, i32) {
    %c0_i32 = arith.constant 0 : i32
    %c0_i32_0 = arith.constant 0 : i32
    %c0_i32_1 = arith.constant 0 : i32
    return %c0_i32, %c0_i32_0 : i32, i32
  }
  func.func @transform_5(%arg0: i32) -> (i32, i32) {
    %c0_i32 = arith.constant 0 : i32
    %c0_i32_0 = arith.constant 0 : i32
    return %arg0, %c0_i32 : i32, i32
  }
}

</mosaic_0001>

<bundles_post_ra>
// kernel: linear_qnet_forward.1
= control target key start
LH: loop header
LB: loop body
LE: loop exit
PB: predicated region body
PF: predicated region fallthrough
CT: control target
= control target key end

     0   :  { %10 = vsyncpa [#allocation3], 0  ;;  %s986_s0 = inlined_call_operand.hbm [shape: f32[8,11], index: 0, kind: input, shape index: {}]   ;;  %s987_s1 = inlined_call_operand.hbm [shape: f32[11,128], index: 1, kind: input, shape index: {}]   ;;  %s988_s2 = inlined_call_operand.vmem [shape: f32[1,128], index: 2, kind: input, shape index: {}]   ;;  %s989_s3 = inlined_call_operand.hbm [shape: f32[128,128], index: 3, kind: input, shape index: {}]   ;;  %s990_s4 = inlined_call_operand.vmem [shape: f32[1,128], index: 4, kind: input, shape index: {}]   ;;  %s991_s5 = inlined_call_operand.vmem [shape: f32[8,128], index: 5, kind: output, shape index: {}]  }
   0x1   :  { %11 = vsyncpa [#allocation5], 0  ;;  %s27_s20 = sshll.u32 %s987_s1, 4  ;;  %s691_s21 = smov [#allocation4]   ;;  %s28_s20 = int_to_ptr.hbm [resolvable:$true] %s27_s20 }
   0x2   :  { %s29_s22 = sshll.u32 %s691_s21, 4  ;;  %s17_s25 = sshll.u32 %s986_s0, 4  ;;  %s30_s22 = int_to_ptr.vmem [resolvable:$true] %s29_s22  ;;  %s18_s25 = int_to_ptr.hbm [resolvable:$true] %s17_s25 }
   0x3   :  { %s692_s26 = smov 128   ;;  %s693_s27 = smov 8  }
   0x4   :  { %35 = dma.hbm_to_vmem [thread:$0]  %s28_s20, 256, %s30_s22, [#allocation5], %s692_s26, %s692_s26, %s693_s27  }
   0x5   :  { %s694_s28 = smov [#allocation2]   ;;  %s42_s7 = sshll.u32 %s989_s3, 4  ;;  %s43_s7 = int_to_ptr.hbm [resolvable:$true] %s42_s7 }
   0x6   :  { %s19_s29 = sshll.u32 %s694_s28, 4  ;;  %s695_s1 = smov [#allocation6]   ;;  %s20_s29 = int_to_ptr.vmem [resolvable:$true] %s19_s29 }
   0x7   :  { %22 = dma.hbm_to_vmem [thread:$0]  %s18_s25, 128, %s20_s29, [#allocation3]  }
   0x8   :  { %s44_s8 = sshll.u32 %s695_s1, 4  ;;  %s45_s8 = int_to_ptr.vmem [resolvable:$true] %s44_s8 }
   0x9   :  { %50 = dma.hbm_to_vmem [thread:$0]  %s43_s7, 2048, %s45_s8, [#allocation5], %s692_s26, %s692_s26, %s693_s27  }
   0xa   :  { %687 = dma.done.wait [#allocation3], 128  }
   0xb   :  { %688 = vsyncadd [#allocation3], 4294967168 }
   0xc   :  { %689 = dma.done.wait [#allocation5], 2304  }
   0xd   :  { %690 = vsyncadd [#allocation5], 4294964992  ;;  %vm76_vm0 = vcmask 1042432   ;;  %vm72_vm1 = vcmask 89088   ;;  %v67_v0 = vld [vmem:[#allocation4 + $0x8] sm:$0x7] }
   0xe   :  { %v66_v1 = vld [vmem:[#allocation4] sm:$0xff]  ;;  %v65_v2 = vld [vmem:[#allocation2] sm:$0xff]  ;;  %v78_v3 = vsel %vm76_vm0, %v67_v0, 0  ;;  %v255_v6 = vld [vmem:[#allocation6 + $0x78] sm:$0xff] }
   0xf   :  { %v735_v4 = vand.u32 4294901760, %v66_v1  ;;  %v74_v5 = vsel %vm72_vm1, %v65_v2, 0  ;;  %v254_v7 = vld [vmem:[#allocation6 + $0x70] sm:$0xff]  ;;  %v253_v8 = vld [vmem:[#allocation6 + $0x68] sm:$0xff]  ;;  %v737_v9 = vand.u32 4294901760, %v78_v3  ;;  %v741_v11 = vand.u32 4294901760, %v255_v6 }
  0x10   :  { %v739_v10 = vand.u32 4294901760, %v74_v5  ;;  %v743_v12 = vand.u32 4294901760, %v254_v7  ;;  %v252_v13 = vld [vmem:[#allocation6 + $0x60] sm:$0xff]  ;;  %v251_v14 = vld [vmem:[#allocation6 + $0x58] sm:$0xff]  ;;  %v748_v16 = vand.u32 4294901760, %v253_v8  ;;  %v250_v38 = vld [vmem:[#allocation6 + $0x50] sm:$0xff] }
  0x11   :  { %v746_v15 = vsub.f32 %v66_v1, %v735_v4  ;;  %v750_v17 = vand.u32 4294901760, %v252_v13  ;;  %v752_v18 = vand.u32 4294901760, %v251_v14  ;;  %95 = vmatpush.msra.mxu0 %v737_v9  ;;  %v122_v20 = vsub.f32 %v78_v3, %v737_v9  ;;  %261 = vmatpush.msra.mxu2 %v741_v11  ;;  %v249_v39 = vld [vmem:[#allocation6 + $0x48] sm:$0xff]  ;;  %v248_v42 = vld [vmem:[#allocation6 + $0x40] sm:$0xff]  ;;  %v247_v43 = vld [vmem:[#allocation6 + $0x38] sm:$0xff] }
  0x12   :  { %v756_v19 = vsub.f32 %v74_v5, %v739_v10  ;;  %v760_v21 = vsub.f32 %v255_v6, %v741_v11  ;;  %v763_v22 = vsub.f32 %v254_v7, %v743_v12  ;;  %v767_v24 = vsub.f32 %v253_v8, %v748_v16  ;;  %v246_v44 = vld [vmem:[#allocation6 + $0x30] sm:$0xff]  ;;  %v245_v52 = vld [vmem:[#allocation6 + $0x28] sm:$0xff]  ;;  %v244_v60 = vld [vmem:[#allocation6 + $0x20] sm:$0xff] }
  0x13   :  { %v129_v23 = vand.u32 4294901760, %v746_v15  ;;  %v770_v25 = vsub.f32 %v252_v13, %v750_v17  ;;  %v774_v26 = vsub.f32 %v251_v14, %v752_v18  ;;  %97 = vmatpush.msra.mxu0 %v735_v4  ;;  %v123_v28 = vand.u32 4294901760, %v122_v20  ;;  %263 = vmatpush.msra.mxu2 %v743_v12  ;;  %v243_v3 = vld [vmem:[#allocation6 + $0x18] sm:$0xff]  ;;  %v242_v13 = vld [vmem:[#allocation6 + $0x10] sm:$0xff] }
  0x14   :  { %v100_v27 = vand.u32 4294901760, %v756_v19  ;;  %v303_v29 = vand.u32 4294901760, %v760_v21  ;;  %v309_v30 = vand.u32 4294901760, %v763_v22  ;;  %v315_v32 = vand.u32 4294901760, %v767_v24 }
  0x15   :  { %154 = vmatpush.msrb.mxu0 %v122_v20  ;;  %v130_v31 = vsub.f32 %v746_v15, %v129_v23  ;;  %v321_v33 = vand.u32 4294901760, %v770_v25  ;;  %v124_v35 = vsub.f32 %v122_v20, %v123_v28  ;;  %v327_v41 = vand.u32 4294901760, %v774_v26  ;;  %265 = vmatpush.msra.mxu2 %v748_v16 }
  0x16   :  { %v101_v34 = vsub.f32 %v756_v19, %v100_v27  ;;  %v304_v36 = vsub.f32 %v760_v21, %v303_v29  ;;  %v310_v37 = vsub.f32 %v763_v22, %v309_v30  ;;  %v316_v40 = vsub.f32 %v767_v24, %v315_v32 }
  0x17   :  { %157 = vmatpush.msrb.mxu0 %v746_v15  ;;  %v125_v46 = vand.u32 4294901760, %v124_v35  ;;  %v131_v47 = vand.u32 4294901760, %v130_v31  ;;  %v322_v50 = vsub.f32 %v770_v25, %v321_v33  ;;  %v802_v51 = vand.u32 4294901760, %v250_v38  ;;  %267 = vmatpush.msra.mxu2 %v750_v17 }
  0x18   :  { %v102_v45 = vand.u32 4294901760, %v101_v34  ;;  %v305_v48 = vand.u32 4294901760, %v304_v36  ;;  %v311_v49 = vand.u32 4294901760, %v310_v37  ;;  %v805_v53 = vand.u32 4294901760, %v249_v39 }
  0x19   :  { %126 = vmatpush.msra.mxu1 %v125_v46  ;;  %v807_v54 = vand.u32 4294901760, %v248_v42  ;;  %v809_v55 = vand.u32 4294901760, %v247_v43  ;;  %v811_v56 = vand.u32 4294901760, %v246_v44  ;;  %v317_v57 = vand.u32 4294901760, %v316_v40  ;;  %269 = vmatpush.msra.mxu2 %v752_v18 }
  0x1a   :  { %103 = vmatmul.f32.vlgmr.msra.gmra.mxu0 %v102_v45  ;;  %306 = vmatpush.msra.mxu3 %v305_v48  ;;  %v328_v58 = vsub.f32 %v774_v26, %v327_v41  ;;  %v817_v59 = vsub.f32 %v250_v38, %v802_v51  ;;  %v820_v61 = vsub.f32 %v249_v39, %v805_v53  ;;  %v829_v0 = vand.u32 4294901760, %v245_v52 }
  0x1b   :  { %206 = vmatpush.msra.mxu0 %v123_v28  ;;  %132 = vmatpush.msra.mxu1 %v131_v47  ;;  %v823_v62 = vsub.f32 %v248_v42, %v807_v54  ;;  %v827_v63 = vsub.f32 %v247_v43, %v809_v55  ;;  %v323_v1 = vand.u32 4294901760, %v322_v50  ;;  %v837_v7 = vsub.f32 %v246_v44, %v811_v56 }
  0x1c   :  { %134 = vmatmul.f32.vlgmr.msra.gmra.mxu1 %v739_v10  ;;  %v333_v2 = vand.u32 4294901760, %v817_v59  ;;  %312 = vmatpush.msra.mxu3 %v311_v49  ;;  %v339_v5 = vand.u32 4294901760, %v820_v61  ;;  %v839_v8 = vand.u32 4294901760, %v244_v60  ;;  %v329_v14 = vand.u32 4294901760, %v328_v58 }
  0x1d   :  { %210 = vmatpush.msra.mxu0 %v129_v23  ;;  %179 = vmatpush.msrb.mxu1 %v737_v9  ;;  %v345_v6 = vand.u32 4294901760, %v823_v62  ;;  %v351_v23 = vand.u32 4294901760, %v827_v63  ;;  %v851_v28 = vsub.f32 %v245_v52, %v829_v0  ;;  %v853_v31 = vand.u32 4294901760, %v243_v3 }
  0x1e   :  { %v334_v15 = vsub.f32 %v817_v59, %v333_v2  ;;  %271 = vmatpush.msra.mxu2 %v802_v51  ;;  %318 = vmatpush.msra.mxu3 %v317_v57  ;;  %v340_v20 = vsub.f32 %v820_v61, %v339_v5  ;;  %v857_v34 = vand.u32 4294901760, %v242_v13  ;;  %v357_v37 = vand.u32 4294901760, %v837_v7 }
  0x1f   :  { %181 = vmatpush.msrb.mxu1 %v735_v4  ;;  %v346_v36 = vsub.f32 %v823_v62, %v345_v6  ;;  %v865_v38 = vsub.f32 %v244_v60, %v839_v8  ;;  %v352_v39 = vsub.f32 %v827_v63, %v351_v23  ;;  %v363_v40 = vand.u32 4294901760, %v851_v28 }
  0x20   :  { %273 = vmatpush.msra.mxu2 %v805_v53  ;;  %324 = vmatpush.msra.mxu3 %v323_v1  ;;  %v335_v35 = vand.u32 4294901760, %v334_v15  ;;  %v874_v42 = vsub.f32 %v243_v3, %v853_v31  ;;  %v358_v43 = vsub.f32 %v837_v7, %v357_v37  ;;  %v885_v45 = vsub.f32 %v242_v13, %v857_v34  ;;  %v241_v1 = vld [vmem:[#allocation6 + $0x8] sm:$0xff]  ;;  %v240_v13 = vld [vmem:[#allocation6] sm:$0xff] }
  0x21   :  { %231 = vmatpush.msra.mxu1 %v737_v9  ;;  %v341_v9 = vand.u32 4294901760, %v340_v20  ;;  %v369_v44 = vand.u32 4294901760, %v865_v38  ;;  %v288_v3 = vand.u32 4294901760, %v241_v1  ;;  %v290_v15 = vand.u32 4294901760, %v240_v13 }
  0x22   :  { %160 = vmatmul.f32.vlgmr.msrb.gmra.mxu0 %v756_v19  ;;  %275 = vmatpush.msra.mxu2 %v807_v54  ;;  %v353_v19 = vand.u32 4294901760, %v352_v39  ;;  %v375_v46 = vand.u32 4294901760, %v874_v42  ;;  %v359_v47 = vand.u32 4294901760, %v358_v43  ;;  %v381_v49 = vand.u32 4294901760, %v885_v45 }
  0x23   :  { %233 = vmatpush.msra.mxu1 %v735_v4  ;;  %330 = vmatpush.msra.mxu3 %v329_v14  ;;  %v347_v4 = vand.u32 4294901760, %v346_v36  ;;  %v370_v48 = vsub.f32 %v865_v38, %v369_v44  ;;  %v386_v14 = vsub.f32 %v241_v1, %v288_v3 }
  0x24   :  { %404 = vmatpush.msrb.mxu0 %v760_v21  ;;  %185 = vmatmul.f32.vlgmr.msrb.gmra.mxu1 %v100_v27  ;;  %v364_v27 = vsub.f32 %v851_v28, %v363_v40  ;;  %v376_v52 = vsub.f32 %v874_v42, %v375_v46  ;;  %v382_v58 = vsub.f32 %v885_v45, %v381_v49 }
  0x25   :  { %277 = vmatpush.msra.mxu2 %v809_v55  ;;  %336 = vmatpush.msra.mxu3 %v335_v35  ;;  %v371_v57 = vand.u32 4294901760, %v370_v48  ;;  %v387_v20 = vand.u32 4294901760, %v386_v14  ;;  %v392_v35 = vsub.f32 %v240_v13, %v290_v15 }
  0x26   :  { %407 = vmatpush.msrb.mxu0 %v763_v22  ;;  %457 = vmatpush.msrb.mxu1 %v741_v11  ;;  %v365_v50 = vand.u32 4294901760, %v364_v27  ;;  %v377_v60 = vand.u32 4294901760, %v376_v52 }
  0x27   :  { %279 = vmatpush.msra.mxu2 %v811_v56  ;;  %342 = vmatpush.msra.mxu3 %v341_v9  ;;  %v388_v36 = vsub.f32 %v386_v14, %v387_v20  ;;  %v393_v9 = vand.u32 4294901760, %v392_v35 }
  0x28   :  { %410 = vmatpush.msrb.mxu0 %v767_v24  ;;  %459 = vmatpush.msrb.mxu1 %v743_v12 }
  0x29   :  { %281 = vmatpush.msra.mxu2 %v829_v0  ;;  %348 = vmatpush.msra.mxu3 %v347_v4  ;;  %v389_v39 = vand.u32 4294901760, %v388_v36  ;;  %v394_v4 = vsub.f32 %v392_v35, %v393_v9 }
  0x2a   :  { %212 = vmatmul.f32.vlgmr.msra.gmra.mxu0 %v739_v10  ;;  %461 = vmatpush.msrb.mxu1 %v748_v16 }
  0x2b   :  { %283 = vmatpush.msra.mxu2 %v839_v8  ;;  %413 = vmatpush.msrb.mxu0 %v770_v25  ;;  %v395_v43 = vand.u32 4294901760, %v394_v4 }
  0x2c   :  { %354 = vmatpush.msra.mxu3 %v353_v19  ;;  %235 = vmatmul.f32.vlgmr.msra.gmra.mxu1 %v739_v10  ;;  %v383_v10 = vand.u32 4294901760, %v382_v58 }
  0x2d   :  { %285 = vmatpush.msra.mxu2 %v853_v31  ;;  %416 = vmatpush.msrb.mxu0 %v774_v26 }
  0x2e   :  { %360 = vmatpush.msra.mxu3 %v359_v47  ;;  %463 = vmatpush.msrb.mxu1 %v750_v17 }
  0x2f   :  { %287 = vmatpush.msra.mxu2 %v857_v34  ;;  %419 = vmatpush.msrb.mxu0 %v817_v59 }
  0x30   :  { %366 = vmatpush.msra.mxu3 %v365_v50  ;;  %465 = vmatpush.msrb.mxu1 %v752_v18 }
  0x31   :  { %422 = vmatpush.msrb.mxu0 %v820_v61  ;;  %289 = vmatpush.msra.mxu2 %v288_v3 }
  0x32   :  { %372 = vmatpush.msra.mxu3 %v371_v57  ;;  %467 = vmatpush.msrb.mxu1 %v802_v51 }
  0x33   :  { %425 = vmatpush.msrb.mxu0 %v823_v62  ;;  %291 = vmatpush.msra.mxu2 %v290_v15 }
  0x34   :  { %378 = vmatpush.msra.mxu3 %v377_v60  ;;  %469 = vmatpush.msrb.mxu1 %v805_v53 }
  0x35   :  { %428 = vmatpush.msrb.mxu0 %v827_v63  ;;  %498 = vmatpush.msrb.mxu2 %v303_v29 }
  0x36   :  { %384 = vmatpush.msra.mxu3 %v383_v10  ;;  %471 = vmatpush.msrb.mxu1 %v807_v54 }
  0x37   :  { %431 = vmatpush.msrb.mxu0 %v837_v7  ;;  %502 = vmatpush.msrb.mxu2 %v309_v30 }
  0x38   :  { %473 = vmatpush.msrb.mxu1 %v809_v55  ;;  %390 = vmatpush.msra.mxu3 %v389_v39 }
  0x39   :  { %434 = vmatpush.msrb.mxu0 %v851_v28  ;;  %506 = vmatpush.msrb.mxu2 %v315_v32 }
  0x3a   :  { %475 = vmatpush.msrb.mxu1 %v811_v56  ;;  %396 = vmatpush.msra.mxu3 %v395_v43 }
  0x3b   :  { %437 = vmatpush.msrb.mxu0 %v865_v38  ;;  %510 = vmatpush.msrb.mxu2 %v321_v33 }
  0x3c   :  { %477 = vmatpush.msrb.mxu1 %v829_v0  ;;  %565 = vmatpush.msrb.mxu3 %v741_v11 }
  0x3d   :  { %440 = vmatpush.msrb.mxu0 %v874_v42  ;;  %514 = vmatpush.msrb.mxu2 %v327_v41 }
  0x3e   :  { %479 = vmatpush.msrb.mxu1 %v839_v8  ;;  %567 = vmatpush.msrb.mxu3 %v743_v12  ;;  %v613_v12 = vld [vmem:[%s988_s2] ss:$0 sm:$0xff] }
  0x3f   :  { %443 = vmatpush.msrb.mxu0 %v885_v45  ;;  %518 = vmatpush.msrb.mxu2 %v333_v2 }
  0x40   :  { %481 = vmatpush.msrb.mxu1 %v853_v31  ;;  %569 = vmatpush.msrb.mxu3 %v748_v16 }
  0x41   :  { %446 = vmatpush.msrb.mxu0 %v386_v14  ;;  %522 = vmatpush.msrb.mxu2 %v339_v5 }
  0x42   :  { %483 = vmatpush.msrb.mxu1 %v857_v34  ;;  %571 = vmatpush.msrb.mxu3 %v750_v17 }
  0x43   :  { %449 = vmatpush.msrb.mxu0 %v392_v35  ;;  %526 = vmatpush.msrb.mxu2 %v345_v6 }
  0x44   :  { %485 = vmatpush.msrb.mxu1 %v288_v3  ;;  %573 = vmatpush.msrb.mxu3 %v752_v18 }
  0x45   :  { %530 = vmatpush.msrb.mxu2 %v351_v23 }
  0x46   :  { %487 = vmatpush.msrb.mxu1 %v290_v15  ;;  %575 = vmatpush.msrb.mxu3 %v802_v51 }
  0x47   :  { %534 = vmatpush.msrb.mxu2 %v357_v37 }
  0x48   :  { %577 = vmatpush.msrb.mxu3 %v805_v53 }
  0x49   :  { %538 = vmatpush.msrb.mxu2 %v363_v40 }
  0x4a   :  { %579 = vmatpush.msrb.mxu3 %v807_v54 }
  0x4b   :  { %542 = vmatpush.msrb.mxu2 %v369_v44 }
  0x4c   :  { %581 = vmatpush.msrb.mxu3 %v809_v55 }
  0x4d   :  { %546 = vmatpush.msrb.mxu2 %v375_v46 }
  0x4e   :  { %583 = vmatpush.msrb.mxu3 %v811_v56  ;;  %v614_v56 = vld [vmem:[%s990_s4] ss:$0 sm:$0xff] }
  0x4f   :  { %550 = vmatpush.msrb.mxu2 %v381_v49 }
  0x50   :  { %585 = vmatpush.msrb.mxu3 %v829_v0 }
  0x51   :  { %554 = vmatpush.msrb.mxu2 %v387_v20 }
  0x52   :  { %587 = vmatpush.msrb.mxu3 %v839_v8 }
  0x53   :  { %558 = vmatpush.msrb.mxu2 %v393_v9 }
  0x54   :  { %589 = vmatpush.msrb.mxu3 %v853_v31 }
  0x56   :  { %591 = vmatpush.msrb.mxu3 %v857_v34 }
  0x58   :  { %593 = vmatpush.msrb.mxu3 %v288_v3 }
  0x5a   :  { %595 = vmatpush.msrb.mxu3 %v290_v15 }
  0x97   :  { %v104_v11 = vpop.f32.mrf.mxu0 }
  0x98   :  { %v105_v17 = vadd.f32 %v613_v12, %v104_v11 }
  0x99   :  { %v135_v16 = vpop.f32.mrf.mxu1 }
  0x9a   :  { %v136_v21 = vadd.f32 %v135_v16, %v105_v17 }
  0x9f   :  { %v161_v18 = vpop.f32.mrf.mxu0 }
  0xa0   :  { %v162_v22 = vadd.f32 %v161_v18, %v136_v21 }
  0xa1   :  { %v186_v24 = vpop.f32.mrf.mxu1 }
  0xa2   :  { %v187_v25 = vadd.f32 %v186_v24, %v162_v22 }
  0xa7   :  { %v213_v26 = vpop.f32.mrf.mxu0 }
  0xa8   :  { %v214_v29 = vadd.f32 %v213_v26, %v187_v25 }
  0xa9   :  { %v236_v30 = vpop.f32.mrf.mxu1 }
  0xaa   :  { %v237_v32 = vadd.f32 %v236_v30, %v214_v29 }
  0xac   :  { %v239_v33 = vmax.f32 %v237_v32, 0.0 }
  0xae   :  { %v292_v41 = vand.u32 4294901760, %v239_v33 }
  0xb0   :  { %v293_v51 = vsub.f32 %v239_v33, %v292_v41  ;;  %398 = vmatmul.f32.vlgmr.msra.gmra.mxu3 %v292_v41 }
  0xb2   :  { %452 = vmatmul.f32.vlgmr.msrb.gmra.mxu0 %v293_v51  ;;  %v294_v53 = vand.u32 4294901760, %v293_v51 }
  0xb4   :  { %491 = vmatmul.f32.vlgmr.msrb.gmra.mxu1 %v294_v53  ;;  %v295_v54 = vsub.f32 %v293_v51, %v294_v53 }
  0xb6   :  { %v296_v55 = vand.u32 4294901760, %v295_v54 }
  0xb8   :  { %297 = vmatmul.f32.vlgmr.msra.gmra.mxu2 %v296_v55  ;;  %597 = vmatmul.f32.vlgmr.msrb.gmra.mxu3 %v292_v41 }
  0xc0   :  { %560 = vmatmul.f32.vlgmr.msrb.gmra.mxu2 %v292_v41 }
 0x12f   :  { %v453_v0 = vpop.f32.mrf.mxu0 }
 0x131   :  { %v492_v5 = vpop.f32.mrf.mxu1 }
 0x133   :  { %v399_v59 = vpop.f32.mrf.mxu3 }
 0x13b   :  { %v298_v61 = vpop.f32.mrf.mxu2  ;;  %v598_v23 = vpop.f32.mrf.mxu3 }
 0x13c   :  { %v299_v62 = vadd.f32 %v614_v56, %v298_v61 }
 0x13e   :  { %v400_v63 = vadd.f32 %v399_v59, %v299_v62 }
 0x140   :  { %v454_v2 = vadd.f32 %v453_v0, %v400_v63 }
 0x142   :  { %v493_v6 = vadd.f32 %v492_v5, %v454_v2 }
 0x143   :  { %v561_v7 = vpop.f32.mrf.mxu2 }
 0x144   :  { %v562_v8 = vadd.f32 %v561_v7, %v493_v6 }
 0x146   :  { %v599_v28 = vadd.f32 %v598_v23, %v562_v8 }
 0x148   :  { %601 = vst [vmem:[%s991_s5] sm:$0xff] %v599_v28 }
 0x149   :  { %606 = vsyncpa [#allocation3], 1 }
 0x14a   :  { %607 = vsyncpa [#allocation5], 1 }

</bundles_post_ra>
